<compile_context>
chip_gen: v6e
topology: v6e:2x2x1
jax: 0.10.0
libtpu: 0.0.40
codegen_flags: <defaults>
</compile_context>

<pallas_src>
import numpy as np
import jax
import jax.numpy as jnp
from jax.experimental import pallas as pl
from jax.experimental.pallas import tpu as pltpu


MP = 128                      # lane width of every kernel operand ((n, 8, 8) grid, N*64 <= 128)
G, CG, COG = 3, 2, 2          # groups, in-channels/group, out-channels/group
CIN = COUT = 6
HO = WO = 7                   # intermediate (and transpose-phase) spatial size


def _convmodel_kernel(x_ref, w_ref, o_ref):
    """Whole ConvModel forward on one lane-dense (8, 128) slab.

    x_ref : (8, 128)  rows 0..5 = channels of x[:, :, 1::2, 1::2] (channel-major),
                      row 6 = lane-valid ones (bias1 carrier), row 7 = zeros.
                      lanes = (n, r, c) over an 8x8 map per sample.
    w_ref : (16, 128) rows 0..7 = packed Conv2d weight (+ bias1 column),
                      rows 8..15 = packed ConvTranspose2d-equivalent weight.
    o_ref : (8, 128)  rows 0..5 = odd-odd phase of the ConvTranspose2d output (pre-bias2).
    """
    xs = x_ref[...]                                                   # (8, 128) = 1 vreg

    lane = jax.lax.broadcasted_iota(jnp.int32, (8, MP), 1)
    r = (lane >> 3) & 7                                               # row on the 8x8 map
    c = lane & 7                                                      # col on the 8x8 map
    row_ok = (r >= 1).astype(jnp.float32)                             # conv1 top zero-pad
    col_ok = (c >= 1).astype(jnp.float32)                             # conv1 left zero-pad
    interior = ((r < 7) & (c < 7)).astype(jnp.float32)                # valid 7x7 positions

    # ---- Conv2d stage: im2col via 9 static lane rolls, one block-diagonal MXU matmul ----
    p_blocks = []
    for kh in range(3):
        for kw in range(3):
            s = (kh - 1) * 8 + (kw - 1)                               # lane shift of this tap
            t = pltpu.roll(xs, shift=(-s) % MP, axis=1) if s else xs
            if kh == 0:                                               # tap reads row -1 at r=0
                t = t * row_ok
            if kw == 0:                                               # tap reads col -1 at c=0
                t = t * col_ok
            p_blocks.append(t)
    p = jnp.concatenate(p_blocks, axis=0)                             # (72, 128)
    y = jnp.dot(w_ref[0:8, 0:72], p,
                preferred_element_type=jnp.float32,
                precision=jax.lax.Precision.HIGHEST)                  # (8, 128)
    # Force exact zeros on the pad row/col; every circular-wrap read of the transpose
    # taps below lands on such a lane, so stage 2 needs no masks at all.
    y = y * interior

    # ---- ConvTranspose2d stage: odd-odd output phase == 3x3 stride-1 pad-1 grouped conv ----
    y_blocks = []
    for kh in range(3):
        for kw in range(3):
            s = (kh - 1) * 8 + (kw - 1)
            y_blocks.append(pltpu.roll(y, shift=(-s) % MP, axis=1) if s else y)
    ys = jnp.concatenate(y_blocks, axis=0)                            # (72, 128)
    o_ref[...] = jnp.dot(w_ref[8:16, 0:72], ys,
                         preferred_element_type=jnp.float32,
                         precision=jax.lax.Precision.HIGHEST)         # (8, 128)


def pack_params(w1, b1, w2):
    """One-time host-side packing of both conv layers into a single (16, 128) operand.

    Hoisted out of the jitted forward (weights only change per optimizer step), so the
    per-call graph contains no tiny update-slice/concat fusions.
    """
    w1 = np.asarray(w1, np.float32)       # (6, 2, 3, 3)  Conv2d weight (OIHW, groups=3)
    b1 = np.asarray(b1, np.float32)       # (6,)
    w2 = np.asarray(w2, np.float32)       # (6, 2, 3, 3)  ConvTranspose2d weight (I, O/g, H, W)

    # Conv2d: rows = out channel, cols = tap*8 + global in channel (block-diagonal groups).
    w1p = np.zeros((8, MP), np.float32)
    for cout in range(COUT):
        g = cout // COG
        for ci in range(CG):
            cin = g * CG + ci
            for kh in range(3):
                for kw in range(3):
                    w1p[cout, (kh * 3 + kw) * 8 + cin] = w1[cout, ci, kh, kw]
    # bias1 rides the constant ones-row (channel slot 6) through the unmasked center tap.
    w1p[:COUT, 4 * 8 + 6] = b1

    # ConvTranspose2d -> equivalent grouped 3x3 conv over y (its only nonzero output phase):
    # flip spatially, swap in/out channel roles within each group.
    w2f = w2[:, :, ::-1, ::-1]
    w2p = np.zeros((8, MP), np.float32)
    for kh in range(3):
        for kw in range(3):
            t = kh * 3 + kw
            for g in range(G):
                blk = w2f[g * CG:(g + 1) * CG, :, kh, kw].T           # (cout/g, cin/g)
                w2p[g * COG:(g + 1) * COG, t * 8 + g * CG: t * 8 + (g + 1) * CG] = blk

    return jnp.asarray(np.concatenate([w1p, w2p], axis=0))            # (16, 128)


@jax.jit
def conv_model_forward(x, w_packed, b2):
    N, Cin, H, W = x.shape
    assert (Cin, H, W) == (6, 16, 16)
    M = N * 64
    assert M <= MP, "this single-slab kernel handles N*64 <= 128 lanes (N <= 2)"

    # Conv2d only reads odd input rows/cols -> lane-dense (8, 128) view of the 8x8 subgrid.
    xs = x[:, :, 1::2, 1::2]                                          # (N, 6, 8, 8)
    xs = jnp.transpose(xs, (1, 0, 2, 3)).reshape(CIN, M)              # channel-major, lanes=(n,r,c)
    xs = jnp.pad(xs, ((0, 0), (0, MP - M)))
    lane_valid = (jnp.arange(MP) < M).astype(jnp.float32)[None, :]    # bias1 carrier / zero pad
    x_op = jnp.concatenate([xs, lane_valid, jnp.zeros((1, MP), jnp.float32)], axis=0)  # (8, 128)

    out = pl.pallas_call(
        _convmodel_kernel,
        out_shape=jax.ShapeDtypeStruct((8, MP), jnp.float32),
        grid=(1,),
        in_specs=[
            pl.BlockSpec((8, MP), lambda i: (0, 0)),
            pl.BlockSpec((16, MP), lambda i: (0, 0)),
        ],
        out_specs=pl.BlockSpec((8, MP), lambda i: (0, 0)),
        compiler_params=pltpu.CompilerParams(
            dimension_semantics=("arbitrary",),
            allow_input_fusion=[True, True],
        ),
    )(x_op, w_packed)

    # Unpack (layout plumbing, outside the kernel): rows 0..5 hold the odd-odd phase of the
    # 15x15 output; every other output position is exactly bias2.
    zc = out[:COUT, :M].reshape(COUT, N, 8, 8)[:, :, :HO, :WO]        # (6, N, 7, 7)
    zc = jnp.transpose(zc, (1, 0, 2, 3))                              # (N, 6, 7, 7)
    z = jax.lax.pad(zc, jnp.array(0.0, zc.dtype),
                    ((0, 0, 0), (0, 0, 0), (1, 1, 1), (1, 1, 1)))     # (N, 6, 15, 15)
    return z + b2[None, :, None, None]


# ---------------------------------------------------------------------------
# Pure-JAX reference (XLA convolutions) for a numerical sanity check
# ---------------------------------------------------------------------------
def reference_forward(x, w1, b1, w2, b2):
    hp = jax.lax.Precision.HIGHEST
    y = jax.lax.conv_general_dilated(
        x, w1, window_strides=(2, 2), padding=((1, 1), (1, 1)),
        rhs_dilation=(2, 2), feature_group_count=3,
        dimension_numbers=("NCHW", "OIHW", "NCHW"), precision=hp)
    y = y + b1[None, :, None, None]

    w_g = w2.reshape(G, CG, COG, 3, 3)[:, :, :, ::-1, ::-1]
    w_eq = jnp.transpose(w_g, (0, 2, 1, 3, 4)).reshape(6, CG, 3, 3)
    pad_eq = 2 * (3 - 1) - 1
    z = jax.lax.conv_general_dilated(
        y, w_eq, window_strides=(1, 1), padding=((pad_eq, pad_eq), (pad_eq, pad_eq)),
        lhs_dilation=(2, 2), rhs_dilation=(2, 2), feature_group_count=3,
        dimension_numbers=("NCHW", "OIHW", "NCHW"), precision=hp)
    return z + b2[None, :, None, None]


if __name__ == "__main__":
    key = jax.random.PRNGKey(0)
    k1, k2, k3, k4, k5 = jax.random.split(key, 5)

    # Deterministic synthetic parameters (shapes implied by groups=3 / kernel_size=3 / bias).
    w1 = jax.random.normal(k1, (6, 2, 3, 3), jnp.float32) * 0.1   # Conv2d weight
    b1 = jax.random.normal(k2, (6,), jnp.float32) * 0.1           # Conv2d bias
    w2 = jax.random.normal(k3, (6, 2, 3, 3), jnp.float32) * 0.1   # ConvTranspose2d weight
    b2 = jax.random.normal(k4, (6,), jnp.float32) * 0.1           # ConvTranspose2d bias

    x = jax.random.normal(k5, (2, 6, 16, 16), jnp.float32)        # NCHW input

    w_packed = pack_params(w1, b1, w2)   # host-side, cached across forward calls

    out = jax.block_until_ready(conv_model_forward(x, w_packed, b2))
    assert out.shape == (2, 6, 15, 15), out.shape

    ref = jax.block_until_ready(reference_forward(x, w1, b1, w2, b2))
    np.testing.assert_allclose(np.asarray(out), np.asarray(ref), rtol=2e-2, atol=2e-2)

    print("KERNEL_OK")
</pallas_src>

<mosaic_0001>
module attributes {stable_mosaic.version = 11 : i64} {
  func.func @_convmodel_kernel(%arg0: i32, %arg1: memref<8x128xf32, #tpu.memory_space<vmem>>, %arg2: memref<16x128xf32, #tpu.memory_space<vmem>>, %arg3: memref<8x128xf32, #tpu.memory_space<vmem>>) attributes {dimension_semantics = [#tpu.dimension_semantics<arbitrary>], iteration_bounds = array<i64: 1>, scalar_prefetch = 0 : i64, scratch_operands = 0 : i64, tpu.core_type = #tpu.core_type<tc>, window_params = [{pipeline_mode = #tpu.pipeline_mode<synchronous>, transform_indices = @transform_0, window_bounds = array<i64: 8, 128>}, {pipeline_mode = #tpu.pipeline_mode<synchronous>, transform_indices = @transform_1, window_bounds = array<i64: 16, 128>}, {pipeline_mode = #tpu.pipeline_mode<synchronous>, transform_indices = @transform_2, window_bounds = array<i64: 8, 128>}]} {
    %c0 = arith.constant 0 : index
    %c0_0 = arith.constant 0 : index
    %0 = vector.load %arg1[%c0, %c0_0] : memref<8x128xf32, #tpu.memory_space<vmem>>, vector<8x128xf32>
    %1 = tpu.iota {dimensions = array<i32: 1>} : vector<8x128xi32>
    %c3_i32 = arith.constant 3 : i32
    %2 = vector.broadcast %c3_i32 : i32 to vector<8x128xi32>
    %3 = arith.shrsi %1, %2 : vector<8x128xi32>
    %c7_i32 = arith.constant 7 : i32
    %4 = vector.broadcast %c7_i32 : i32 to vector<8x128xi32>
    %5 = arith.andi %3, %4 : vector<8x128xi32>
    %c7_i32_1 = arith.constant 7 : i32
    %6 = vector.broadcast %c7_i32_1 : i32 to vector<8x128xi32>
    %7 = arith.andi %1, %6 : vector<8x128xi32>
    %c1_i32 = arith.constant 1 : i32
    %8 = vector.broadcast %c1_i32 : i32 to vector<8x128xi32>
    %9 = arith.cmpi sge, %5, %8 : vector<8x128xi32>
    %10 = arith.extui %9 : vector<8x128xi1> to vector<8x128xi32>
    %11 = arith.sitofp %10 : vector<8x128xi32> to vector<8x128xf32>
    %c1_i32_2 = arith.constant 1 : i32
    %12 = vector.broadcast %c1_i32_2 : i32 to vector<8x128xi32>
    %13 = arith.cmpi sge, %7, %12 : vector<8x128xi32>
    %14 = arith.extui %13 : vector<8x128xi1> to vector<8x128xi32>
    %15 = arith.sitofp %14 : vector<8x128xi32> to vector<8x128xf32>
    %c7_i32_3 = arith.constant 7 : i32
    %16 = vector.broadcast %c7_i32_3 : i32 to vector<8x128xi32>
    %17 = arith.cmpi slt, %5, %16 : vector<8x128xi32>
    %c7_i32_4 = arith.constant 7 : i32
    %18 = vector.broadcast %c7_i32_4 : i32 to vector<8x128xi32>
    %19 = arith.cmpi slt, %7, %18 : vector<8x128xi32>
    %20 = arith.andi %17, %19 : vector<8x128xi1>
    %21 = arith.extui %20 : vector<8x128xi1> to vector<8x128xi32>
    %22 = arith.sitofp %21 : vector<8x128xi32> to vector<8x128xf32>
    %c9_i32 = arith.constant 9 : i32
    %23 = tpu.dynamic_rotate %0 by %c9_i32 dim 1 : vector<8x128xf32>, i32 -> vector<8x128xf32>
    %24 = arith.mulf %23, %11 : vector<8x128xf32>
    %25 = arith.mulf %24, %15 : vector<8x128xf32>
    %c8_i32 = arith.constant 8 : i32
    %26 = tpu.dynamic_rotate %0 by %c8_i32 dim 1 : vector<8x128xf32>, i32 -> vector<8x128xf32>
    %27 = arith.mulf %26, %11 : vector<8x128xf32>
    %c7_i32_5 = arith.constant 7 : i32
    %28 = tpu.dynamic_rotate %0 by %c7_i32_5 dim 1 : vector<8x128xf32>, i32 -> vector<8x128xf32>
    %29 = arith.mulf %28, %11 : vector<8x128xf32>
    %c1_i32_6 = arith.constant 1 : i32
    %30 = tpu.dynamic_rotate %0 by %c1_i32_6 dim 1 : vector<8x128xf32>, i32 -> vector<8x128xf32>
    %31 = arith.mulf %30, %15 : vector<8x128xf32>
    %c127_i32 = arith.constant 127 : i32
    %32 = tpu.dynamic_rotate %0 by %c127_i32 dim 1 : vector<8x128xf32>, i32 -> vector<8x128xf32>
    %c121_i32 = arith.constant 121 : i32
    %33 = tpu.dynamic_rotate %0 by %c121_i32 dim 1 : vector<8x128xf32>, i32 -> vector<8x128xf32>
    %34 = arith.mulf %33, %15 : vector<8x128xf32>
    %c120_i32 = arith.constant 120 : i32
    %35 = tpu.dynamic_rotate %0 by %c120_i32 dim 1 : vector<8x128xf32>, i32 -> vector<8x128xf32>
    %c119_i32 = arith.constant 119 : i32
    %36 = tpu.dynamic_rotate %0 by %c119_i32 dim 1 : vector<8x128xf32>, i32 -> vector<8x128xf32>
    %37 = tpu.concatenate %25, %27, %29, %31, %0, %32, %34, %35, %36 in 0 : vector<8x128xf32>, vector<8x128xf32>, vector<8x128xf32>, vector<8x128xf32>, vector<8x128xf32>, vector<8x128xf32>, vector<8x128xf32>, vector<8x128xf32>, vector<8x128xf32> -> vector<72x128xf32>
    %c0_7 = arith.constant 0 : index
    %c0_8 = arith.constant 0 : index
    %38 = vector.load %arg2[%c0_7, %c0_8] : memref<16x128xf32, #tpu.memory_space<vmem>>, vector<8x72xf32>
    %cst = arith.constant dense<0.000000e+00> : vector<8x128xf32>
    %39 = tpu.matmul %38, %37, %cst {dimension_numbers = #tpu.dot_dimension_numbers<[1], [0], [0], [1], [0, 0, 1, 1], [], []>, precision = #tpu.contract_precision<fp32>} : vector<8x72xf32>, vector<72x128xf32>, vector<8x128xf32> -> vector<8x128xf32>
    %40 = arith.mulf %39, %22 : vector<8x128xf32>
    %c9_i32_9 = arith.constant 9 : i32
    %41 = tpu.dynamic_rotate %40 by %c9_i32_9 dim 1 : vector<8x128xf32>, i32 -> vector<8x128xf32>
    %c8_i32_10 = arith.constant 8 : i32
    %42 = tpu.dynamic_rotate %40 by %c8_i32_10 dim 1 : vector<8x128xf32>, i32 -> vector<8x128xf32>
    %c7_i32_11 = arith.constant 7 : i32
    %43 = tpu.dynamic_rotate %40 by %c7_i32_11 dim 1 : vector<8x128xf32>, i32 -> vector<8x128xf32>
    %c1_i32_12 = arith.constant 1 : i32
    %44 = tpu.dynamic_rotate %40 by %c1_i32_12 dim 1 : vector<8x128xf32>, i32 -> vector<8x128xf32>
    %c127_i32_13 = arith.constant 127 : i32
    %45 = tpu.dynamic_rotate %40 by %c127_i32_13 dim 1 : vector<8x128xf32>, i32 -> vector<8x128xf32>
    %c121_i32_14 = arith.constant 121 : i32
    %46 = tpu.dynamic_rotate %40 by %c121_i32_14 dim 1 : vector<8x128xf32>, i32 -> vector<8x128xf32>
    %c120_i32_15 = arith.constant 120 : i32
    %47 = tpu.dynamic_rotate %40 by %c120_i32_15 dim 1 : vector<8x128xf32>, i32 -> vector<8x128xf32>
    %c119_i32_16 = arith.constant 119 : i32
    %48 = tpu.dynamic_rotate %40 by %c119_i32_16 dim 1 : vector<8x128xf32>, i32 -> vector<8x128xf32>
    %49 = tpu.concatenate %41, %42, %43, %44, %40, %45, %46, %47, %48 in 0 : vector<8x128xf32>, vector<8x128xf32>, vector<8x128xf32>, vector<8x128xf32>, vector<8x128xf32>, vector<8x128xf32>, vector<8x128xf32>, vector<8x128xf32>, vector<8x128xf32> -> vector<72x128xf32>
    %c8 = arith.constant 8 : index
    %c0_17 = arith.constant 0 : index
    %50 = vector.load %arg2[%c8, %c0_17] : memref<16x128xf32, #tpu.memory_space<vmem>>, vector<8x72xf32>
    %cst_18 = arith.constant dense<0.000000e+00> : vector<8x128xf32>
    %51 = tpu.matmul %50, %49, %cst_18 {dimension_numbers = #tpu.dot_dimension_numbers<[1], [0], [0], [1], [0, 0, 1, 1], [], []>, precision = #tpu.contract_precision<fp32>} : vector<8x72xf32>, vector<72x128xf32>, vector<8x128xf32> -> vector<8x128xf32>
    %c0_19 = arith.constant 0 : index
    %c0_20 = arith.constant 0 : index
    %52 = vector.load %arg3[%c0_19, %c0_20] : memref<8x128xf32, #tpu.memory_space<vmem>>, vector<8x128xf32>
    tpu.vector_store %arg3[%c0_19, %c0_20], %51 {strides = array<i32>} : memref<8x128xf32, #tpu.memory_space<vmem>>, vector<8x128xf32>,
    return
  }
  func.func @transform_0(%arg0: i32) -> (i32, i32) {
    %c0_i32 = arith.constant 0 : i32
    %c0_i32_0 = arith.constant 0 : i32
    %c0_i32_1 = arith.constant 0 : i32
    return %c0_i32, %c0_i32_0 : i32, i32
  }
  func.func @transform_1(%arg0: i32) -> (i32, i32) {
    %c0_i32 = arith.constant 0 : i32
    %c0_i32_0 = arith.constant 0 : i32
    %c0_i32_1 = arith.constant 0 : i32
    return %c0_i32, %c0_i32_0 : i32, i32
  }
  func.func @transform_2(%arg0: i32) -> (i32, i32) {
    %c0_i32 = arith.constant 0 : i32
    %c0_i32_0 = arith.constant 0 : i32
    %c0_i32_1 = arith.constant 0 : i32
    return %c0_i32, %c0_i32_0 : i32, i32
  }
}

</mosaic_0001>

<bundles_post_ra>
// kernel: conv_model_forward.2
= control target key start
LH: loop header
LB: loop body
LE: loop exit
PB: predicated region body
PF: predicated region fallthrough
CT: control target
= control target key end

     0   :  { %v1637_v2 = vmov 0.0   ;;  %v50_v3 = vlaneseq  ;;  %vm55_vm1 = vcmask 1041408   ;;  %s1639_s25 = smov 119   ;;  %s1641_s26 = smov 127   ;;  %vm1644_vm3 = vmmov 0   ;;  %s2163_s0 = inlined_call_operand.vmem [shape: f32[16,128], index: 0, kind: input, shape index: {}]   ;;  %s2164_s1 = inlined_call_operand.vmem [shape: f32[1,128], index: 1, kind: input, shape index: {}]   ;;  %s2165_s2 = inlined_call_operand.<no memory space> [shape: f32[], index: 2, kind: input, shape index: {}]   ;;  %s2166_s3 = inlined_call_operand.vmem [shape: f32[6,128], index: 3, kind: input, shape index: {}]   ;;  %s2167_s4 = inlined_call_operand.vmem [shape: f32[8], index: 4, kind: input, shape index: {}]   ;;  %s2168_s5 = inlined_call_operand.vmem [shape: f32[8,128], index: 5, kind: output, shape index: {}]  }
   0x1   :  { %v10_v0 = vstv %s2165_s2  ;;  %v64_v1 = vld [vmem:[%s2167_s4] ss:$0 sm:$0xff]  ;;  %1375 = vmatprep.subr.mxu0 %v1637_v2  ;;  %1396 = vmatprep.subr.mxu1 %v1637_v2  ;;  %s1638_s4 = smov 121   ;;  %s1642_s27 = smov 1   ;;  %vm119_vm5 = vcmask 588800  }
   0x2   :  { %66 = vbcast.lane.b32.xlu0 %v64_v1, 256  ;;  %v51_v4 = vshrl.u32 %v50_v3, 7  ;;  %v49_v6 = vld [vmem:[%s2164_s1] sm:$0x1]  ;;  %s1640_s1 = smov 120   ;;  %1393 = vmatprep.mubr.msk.f32.mxu0 %vm1644_vm3, %v1637_v2  ;;  %s1645_s28 = smov 9  }
   0x3   :  { %v58_v9 = vld [vmem:[%s2166_s3] sm:$0x3f]  ;;  %s1643_s3 = smov 7   ;;  %1414 = vmatprep.mubr.msk.f32.mxu1 %vm1644_vm3, %v1637_v2  ;;  %s1646_s29 = smov 8   ;;  %v1703_v15 = vand.u32 127, %v50_v3 }
   0x4   :  { %v52_v5 = vadd.s32 8, %v51_v4  ;;  %vm62_vm2 = vcmp.lt.s32.totalorder %v51_v4, 6  ;;  %v118_v18 = vld [vmem:[%s2163_s0] sm:$0xff] }
   0x5   :  { %v63_v11 = vsel %vm62_vm2, %v58_v9, %v10_v0  ;;  %v84_v16 = vand.u32 7, %v1703_v15  ;;  %v82_v17 = vshra.s32 %v1703_v15, 3  ;;  %v121_v23 = vsel %vm119_vm5, %v118_v18, 0  ;;  %v690_v15 = vld [vmem:[%s2163_s0 + $0x8] sm:$0xff] }
   0x6   :  { %vm53_vm0 = vcmp.lt.s32.totalorder %v52_v5, 9  ;;  %v1725_v28 = vand.u32 4294901760, %v121_v23 }
   0x7   :  { %v54_v7 = vsel %vm53_vm0, %v49_v6, %v10_v0  ;;  %vm88_vm4 = vcmp.ge.s32.totalorder %v84_v16, 1  ;;  %v1713_v20 = vand.u32 7, %v82_v17  ;;  %vm92_vm8 = vcmp.lt.s32.totalorder %v84_v16, 7 }
   0x8   :  { %v56_v8 = vsel %vm55_vm1, %v54_v7, %v10_v0  ;;  %v1253_v19 = vsel %vm88_vm4, 1.0, %v1637_v2  ;;  %v1750_v40 = vsub.f32 %v121_v23, %v1725_v28  ;;  %v692_v16 = vsel %vm119_vm5, %v690_v15, 0 }
   0x9   :  { %v57_v10 = vrot.slane %v56_v8, 2  ;;  %vm85_vm6 = vcmp.ge.s32.totalorder %v1713_v20, 1  ;;  %vm91_vm7 = vcmp.lt.s32.totalorder %v1713_v20, 7  ;;  %v1950_v20 = vand.u32 4294901760, %v692_v16 }
   0xa   :  { %v1252_v36 = vsel %vm85_vm6, 1.0, %v1637_v2  ;;  %v199_v53 = vand.u32 4294901760, %v1750_v40  ;;  %vm93_vm9 = vmand %vm91_vm7, %vm92_vm8 }
   0xb   :  { %v70_v12 = vmax.f32 %v63_v11, %v57_v10 }
   0xc   :  { %v200_v3 = vsub.f32 %v1750_v40, %v199_v53 }
  0x74   :  { %v67_v13 = vpop.permute.xlu0 %66 }
  0x75   :  { %v74_v14 = vmax.f32 %v70_v12, %v67_v13  ;;  %v201_v13 = vand.u32 4294901760, %v200_v3 }
  0x77   :  { %111 = vrot.lane.b32.xlu1 %v74_v14, %s1638_s4  ;;  %116 = vrot.lane.b32.xlu0 %v74_v14, %s1639_s25  ;;  %v1728_v31 = vand.u32 4294901760, %v74_v14 }
  0x79   :  { %v1755_v44 = vsub.f32 %v74_v14, %v1728_v31 }
  0x7b   :  { %114 = vrot.lane.b32.xlu1 %v74_v14, %s1640_s1  ;;  %109 = vrot.lane.b32.xlu0 %v74_v14, %s1641_s26  ;;  %v252_v57 = vand.u32 4294901760, %v1755_v44 }
  0x7d   :  { %v253_v6 = vsub.f32 %v1755_v44, %v252_v57 }
  0x7f   :  { %106 = vrot.lane.b32.xlu1 %v74_v14, %s1642_s27  ;;  %103 = vrot.lane.b32.xlu0 %v74_v14, %s1643_s3  ;;  %v254_v17 = vand.u32 4294901760, %v253_v6 }
  0x83   :  { %96 = vrot.lane.b32.xlu1 %v74_v14, %s1645_s28  ;;  %100 = vrot.lane.b32.xlu0 %v74_v14, %s1646_s29 }
  0xe9   :  { %v112_v21 = vpop.permute.xlu1 %111  ;;  %v117_v22 = vpop.permute.xlu0 %116 }
  0xea   :  { %v113_v24 = vmul.f32 %v1253_v19, %v112_v21  ;;  %v1716_v25 = vand.u32 4294901760, %v117_v22 }
  0xec   :  { %v1718_v26 = vand.u32 4294901760, %v113_v24  ;;  %v1721_v27 = vsub.f32 %v117_v22, %v1716_v25  ;;  %1376 = vmatpush3.msra.mxu0 %v1716_v25 }
  0xed   :  { %v115_v29 = vpop.permute.xlu1 %114  ;;  %v110_v30 = vpop.permute.xlu0 %109  ;;  %1377 = vmatprep.subr.mxu0 %v1637_v2 }
  0xee   :  { %v1731_v32 = vsub.f32 %v113_v24, %v1718_v26  ;;  %v1733_v33 = vand.u32 4294901760, %v115_v29  ;;  %v1735_v34 = vand.u32 4294901760, %v110_v30  ;;  %v224_v35 = vand.u32 4294901760, %v1721_v27 }
  0xf0   :  { %v1740_v37 = vsub.f32 %v115_v29, %v1733_v33  ;;  %v1743_v38 = vsub.f32 %v110_v30, %v1735_v34  ;;  %1378 = vmatpush3.msra.mxu0 %v1733_v33  ;;  %v225_v39 = vsub.f32 %v1721_v27, %v224_v35  ;;  %v238_v43 = vand.u32 4294901760, %v1731_v32 }
  0xf1   :  { %v107_v41 = vpop.permute.xlu1 %106  ;;  %1379 = vmatprep.subr.mxu0 %v1637_v2  ;;  %v104_v42 = vpop.permute.xlu0 %103 }
  0xf2   :  { %v231_v45 = vand.u32 4294901760, %v1740_v37  ;;  %v108_v46 = vmul.f32 %v1253_v19, %v107_v41  ;;  %v105_v47 = vmul.f32 %v1252_v36, %v104_v42  ;;  %1380 = vmatpush3.msra.mxu0 %v1718_v26  ;;  %v245_v48 = vand.u32 4294901760, %v1743_v38 }
  0xf3   :  { %1381 = vmatprep.subr.mxu0 %v1637_v2  ;;  %v226_v49 = vand.u32 4294901760, %v225_v39  ;;  %v239_v56 = vsub.f32 %v1731_v32, %v238_v43  ;;  %v1254_v41 = vsel %vm93_vm9, 1.0, %v1637_v2 }
  0xf4   :  { %v1761_v50 = vand.u32 4294901760, %v108_v46  ;;  %v1763_v51 = vand.u32 4294901760, %v105_v47  ;;  %1382 = vmatpush3.msra.mxu0 %v1735_v34  ;;  %v232_v52 = vsub.f32 %v1740_v37, %v231_v45  ;;  %v246_v63 = vsub.f32 %v1743_v38, %v245_v48 }
  0xf5   :  { %1397 = vmatpush3.msra.mxu1 %v226_v49  ;;  %v97_v54 = vpop.permute.xlu1 %96  ;;  %1383 = vmatprep.subr.mxu0 %v1637_v2  ;;  %v101_v55 = vpop.permute.xlu0 %100  ;;  %v240_v5 = vand.u32 4294901760, %v239_v56  ;;  %v1970_v56 = vsub.f32 %v692_v16, %v1950_v20 }
  0xf6   :  { %v1776_v58 = vsub.f32 %v108_v46, %v1761_v50  ;;  %v1779_v59 = vsub.f32 %v105_v47, %v1763_v51  ;;  %v98_v60 = vmul.f32 %v1252_v36, %v97_v54  ;;  %v102_v61 = vmul.f32 %v1252_v36, %v101_v55  ;;  %1384 = vmatpush3.msra.mxu0 %v1728_v31 }
  0xf7   :  { %1385 = vmatprep.subr.mxu0 %v1637_v2  ;;  %1398 = vmatprep.subr.mxu1 %v1637_v2  ;;  %v233_v62 = vand.u32 4294901760, %v232_v52  ;;  %v247_v10 = vand.u32 4294901760, %v246_v63 }
  0xf8   :  { %v99_v0 = vmul.f32 %v1253_v19, %v98_v60  ;;  %v1787_v1 = vand.u32 4294901760, %v102_v61  ;;  %1386 = vmatpush3.msra.mxu0 %v1761_v50  ;;  %v259_v4 = vand.u32 4294901760, %v1776_v58  ;;  %v266_v7 = vand.u32 4294901760, %v1779_v59 }
  0xf9   :  { %1399 = vmatpush3.msra.mxu1 %v233_v62  ;;  %1387 = vmatprep.subr.mxu0 %v1637_v2 }
  0xfa   :  { %v1799_v8 = vand.u32 4294901760, %v99_v0  ;;  %v1802_v9 = vsub.f32 %v102_v61, %v1787_v1  ;;  %1400 = vmatprep.subr.mxu1 %v1637_v2  ;;  %1388 = vmatpush3.msra.mxu0 %v1763_v51  ;;  %v260_v11 = vsub.f32 %v1776_v58, %v259_v4  ;;  %v267_v18 = vsub.f32 %v1779_v59, %v266_v7 }
  0xfb   :  { %1401 = vmatpush3.msra.mxu1 %v240_v5  ;;  %1389 = vmatprep.subr.mxu0 %v1637_v2 }
  0xfc   :  { %v1811_v12 = vsub.f32 %v99_v0, %v1799_v8  ;;  %1402 = vmatprep.subr.mxu1 %v1637_v2  ;;  %1390 = vmatpush3.msra.mxu0 %v1787_v1  ;;  %v273_v14 = vand.u32 4294901760, %v1802_v9  ;;  %v261_v21 = vand.u32 4294901760, %v260_v11  ;;  %v268_v23 = vand.u32 4294901760, %v267_v18 }
  0xfd   :  { %1403 = vmatpush3.msra.mxu1 %v247_v10  ;;  %1391 = vmatprep.subr.mxu0 %v1637_v2 }
  0xfe   :  { %1404 = vmatprep.subr.mxu1 %v1637_v2  ;;  %1392 = vmatpush3.msra.mxu0 %v1799_v8  ;;  %v280_v19 = vand.u32 4294901760, %v1811_v12  ;;  %v274_v22 = vsub.f32 %v1802_v9, %v273_v14 }
  0xff   :  { %1405 = vmatpush3.msra.mxu1 %v254_v17  ;;  %1417 = vmatprep.subr.mxu0 %v1637_v2 }
 0x100   :  { %1406 = vmatprep.subr.mxu1 %v1637_v2  ;;  %1394 = vmatmul.mubr.f32.vlgmr.msra.gmra.mxu0 %v201_v13  ;;  %v281_v24 = vsub.f32 %v1811_v12, %v280_v19  ;;  %v275_v29 = vand.u32 4294901760, %v274_v22 }
 0x101   :  { %1407 = vmatpush3.msra.mxu1 %v261_v21  ;;  %1418 = vmatpush3.msra.mxu0 %v1721_v27 }
 0x102   :  { %1408 = vmatprep.subr.mxu1 %v1637_v2  ;;  %1419 = vmatprep.subr.mxu0 %v1637_v2  ;;  %v282_v30 = vand.u32 4294901760, %v281_v24 }
 0x103   :  { %1409 = vmatpush3.msra.mxu1 %v268_v23  ;;  %1420 = vmatpush3.msra.mxu0 %v1740_v37 }
 0x104   :  { %1410 = vmatprep.subr.mxu1 %v1637_v2  ;;  %1421 = vmatprep.subr.mxu0 %v1637_v2 }
 0x105   :  { %1411 = vmatpush3.msra.mxu1 %v275_v29  ;;  %1422 = vmatpush3.msra.mxu0 %v1731_v32 }
 0x106   :  { %1412 = vmatprep.subr.mxu1 %v1637_v2  ;;  %1423 = vmatprep.subr.mxu0 %v1637_v2 }
 0x107   :  { %1413 = vmatpush3.msra.mxu1 %v282_v30  ;;  %1424 = vmatpush3.msra.mxu0 %v1743_v38 }
 0x108   :  { %1415 = vmatmul.mubr.f32.vlgmr.msra.gmra.mxu1 %v1725_v28  ;;  %1425 = vmatprep.subr.mxu0 %v1637_v2 }
 0x109   :  { %1438 = vmatprep.subr.mxu1 %v1637_v2  ;;  %1426 = vmatpush3.msra.mxu0 %v1755_v44 }
 0x10a   :  { %1439 = vmatpush3.msra.mxu1 %v1716_v25  ;;  %1427 = vmatprep.subr.mxu0 %v1637_v2 }
 0x10b   :  { %1440 = vmatprep.subr.mxu1 %v1637_v2  ;;  %1428 = vmatpush3.msra.mxu0 %v1776_v58 }
 0x10c   :  { %1441 = vmatpush3.msra.mxu1 %v1733_v33  ;;  %1429 = vmatprep.subr.mxu0 %v1637_v2 }
 0x10d   :  { %1442 = vmatprep.subr.mxu1 %v1637_v2  ;;  %1430 = vmatpush3.msra.mxu0 %v1779_v59 }
 0x10e   :  { %1443 = vmatpush3.msra.mxu1 %v1718_v26  ;;  %1431 = vmatprep.subr.mxu0 %v1637_v2 }
 0x10f   :  { %1444 = vmatprep.subr.mxu1 %v1637_v2  ;;  %1432 = vmatpush3.msra.mxu0 %v1802_v9 }
 0x110   :  { %1445 = vmatpush3.msra.mxu1 %v1735_v34  ;;  %1433 = vmatprep.subr.mxu0 %v1637_v2 }
 0x111   :  { %1446 = vmatprep.subr.mxu1 %v1637_v2  ;;  %1434 = vmatpush3.msra.mxu0 %v1811_v12 }
 0x112   :  { %1435 = vmatprep.mubr.msk.f32.mxu0 %vm1644_vm3, %v1637_v2  ;;  %1447 = vmatpush3.msra.mxu1 %v1728_v31 }
 0x113   :  { %1436 = vmatmul.mubr.f32.vlgmr.msra.gmra.mxu0 %v1750_v40  ;;  %1448 = vmatprep.subr.mxu1 %v1637_v2 }
 0x114   :  { %1459 = vmatprep.subr.mxu0 %v1637_v2  ;;  %1449 = vmatpush3.msra.mxu1 %v1761_v50 }
 0x115   :  { %1460 = vmatpush3.msra.mxu0 %v224_v35  ;;  %1450 = vmatprep.subr.mxu1 %v1637_v2 }
 0x116   :  { %1461 = vmatprep.subr.mxu0 %v1637_v2  ;;  %1451 = vmatpush3.msra.mxu1 %v1763_v51 }
 0x117   :  { %1462 = vmatpush3.msra.mxu0 %v231_v45  ;;  %1452 = vmatprep.subr.mxu1 %v1637_v2 }
 0x118   :  { %1463 = vmatprep.subr.mxu0 %v1637_v2  ;;  %1453 = vmatpush3.msra.mxu1 %v1787_v1 }
 0x119   :  { %1464 = vmatpush3.msra.mxu0 %v238_v43  ;;  %1454 = vmatprep.subr.mxu1 %v1637_v2 }
 0x11a   :  { %1465 = vmatprep.subr.mxu0 %v1637_v2  ;;  %1455 = vmatpush3.msra.mxu1 %v1799_v8 }
 0x11b   :  { %1456 = vmatprep.mubr.msk.f32.mxu1 %vm1644_vm3, %v1637_v2  ;;  %1466 = vmatpush3.msra.mxu0 %v245_v48 }
 0x11c   :  { %1457 = vmatmul.mubr.f32.vlgmr.msra.gmra.mxu1 %v199_v53  ;;  %1467 = vmatprep.subr.mxu0 %v1637_v2 }
 0x11d   :  { %1480 = vmatprep.subr.mxu1 %v1637_v2  ;;  %1468 = vmatpush3.msra.mxu0 %v252_v57 }
 0x11e   :  { %1481 = vmatpush3.msra.mxu1 %v1716_v25  ;;  %1469 = vmatprep.subr.mxu0 %v1637_v2 }
 0x11f   :  { %1482 = vmatprep.subr.mxu1 %v1637_v2  ;;  %1470 = vmatpush3.msra.mxu0 %v259_v4  ;;  %v770_v4 = vand.u32 4294901760, %v1970_v56 }
 0x120   :  { %1483 = vmatpush3.msra.mxu1 %v1733_v33  ;;  %1471 = vmatprep.subr.mxu0 %v1637_v2 }
 0x121   :  { %1484 = vmatprep.subr.mxu1 %v1637_v2  ;;  %1472 = vmatpush3.msra.mxu0 %v266_v7  ;;  %v771_v21 = vsub.f32 %v1970_v56, %v770_v4 }
 0x122   :  { %1485 = vmatpush3.msra.mxu1 %v1718_v26  ;;  %1473 = vmatprep.subr.mxu0 %v1637_v2 }
 0x123   :  { %1486 = vmatprep.subr.mxu1 %v1637_v2  ;;  %1474 = vmatpush3.msra.mxu0 %v273_v14 }
 0x124   :  { %1487 = vmatpush3.msra.mxu1 %v1735_v34  ;;  %1475 = vmatprep.subr.mxu0 %v1637_v2 }
 0x125   :  { %1488 = vmatprep.subr.mxu1 %v1637_v2  ;;  %1476 = vmatpush3.msra.mxu0 %v280_v19 }
 0x126   :  { %1477 = vmatprep.mubr.msk.f32.mxu0 %vm1644_vm3, %v1637_v2  ;;  %1489 = vmatpush3.msra.mxu1 %v1728_v31 }
 0x127   :  { %1478 = vmatmul.mubr.f32.vlgmr.msra.gmra.mxu0 %v1725_v28  ;;  %1490 = vmatprep.subr.mxu1 %v1637_v2 }
 0x128   :  { %1491 = vmatpush3.msra.mxu1 %v1761_v50  ;;  %1498 = vmatprep.mubr.msk.f32.mxu1 %vm1644_vm3, %v1637_v2 }
 0x129   :  { %1492 = vmatprep.subr.mxu1 %v1637_v2  ;;  %1501 = vmatprep.subr.mxu0 %v1637_v2 }
 0x12a   :  { %1493 = vmatpush3.msra.mxu1 %v1763_v51  ;;  %1519 = vmatprep.mubr.msk.f32.mxu0 %vm1644_vm3, %v1637_v2 }
 0x12b   :  { %1494 = vmatprep.subr.mxu1 %v1637_v2 }
 0x12c   :  { %1495 = vmatpush3.msra.mxu1 %v1787_v1 }
 0x12d   :  { %1496 = vmatprep.subr.mxu1 %v1637_v2 }
 0x12e   :  { %1497 = vmatpush3.msra.mxu1 %v1799_v8 }
 0x12f   :  { %1499 = vmatmul.mubr.f32.vlgmr.msra.gmra.mxu1 %v1725_v28  ;;  %1522 = vmatprep.subr.mxu1 %v1637_v2 }
 0x130   :  { %1540 = vmatprep.mubr.msk.f32.mxu1 %vm1644_vm3, %v1637_v2 }
 0x1c0   :  { %v203_v25 = vpop.f32.mrf.mxu0 }
 0x1c2   :  { %v1395_v26 = vpop.f32.mrf.mxu0 }
 0x1c8   :  { %v319_v27 = vpop.f32.mrf.mxu1 }
 0x1c9   :  { %v320_v37 = vadd.f32 %v319_v27, %v203_v25 }
 0x1ca   :  { %v1416_v31 = vpop.f32.mrf.mxu1 }
 0x1d3   :  { %v409_v32 = vpop.f32.mrf.mxu0 }
 0x1d4   :  { %v410_v28 = vadd.f32 %v409_v32, %v320_v37 }
 0x1d5   :  { %v1437_v33 = vpop.f32.mrf.mxu0 }
 0x1d6   :  { %v772_v33 = vand.u32 4294901760, %v771_v21 }
 0x1dc   :  { %v491_v34 = vpop.f32.mrf.mxu1 }
 0x1dd   :  { %v492_v39 = vadd.f32 %v491_v34, %v410_v28 }
 0x1de   :  { %v1458_v35 = vpop.f32.mrf.mxu1 }
 0x1e7   :  { %v589_v36 = vpop.f32.mrf.mxu0 }
 0x1e8   :  { %v590_v40 = vadd.f32 %v589_v36, %v492_v39 }
 0x1e9   :  { %v1479_v38 = vpop.f32.mrf.mxu0 }
 0x1ef   :  { %v669_v42 = vpop.f32.mrf.mxu1 }
 0x1f0   :  { %v670_v43 = vadd.f32 %v669_v42, %v590_v40 }
 0x1f1   :  { %v1500_v44 = vpop.f32.mrf.mxu1 }
 0x1f2   :  { %v673_v45 = vmul.f32 %v1254_v41, %v670_v43 }
 0x1f4   :  { %686 = vrot.lane.b32.xlu0 %v673_v45, %s1640_s1  ;;  %688 = vrot.lane.b32.xlu1 %v673_v45, %s1639_s25  ;;  %v1952_v48 = vand.u32 4294901760, %v673_v45 }
 0x1f6   :  { %v1967_v55 = vsub.f32 %v673_v45, %v1952_v48 }
 0x1f8   :  { %682 = vrot.lane.b32.xlu0 %v673_v45, %s1641_s26  ;;  %684 = vrot.lane.b32.xlu1 %v673_v45, %s1638_s4  ;;  %v823_v8 = vand.u32 4294901760, %v1967_v55 }
 0x1fa   :  { %v824_v29 = vsub.f32 %v1967_v55, %v823_v8 }
 0x1fc   :  { %678 = vrot.lane.b32.xlu0 %v673_v45, %s1643_s3  ;;  %680 = vrot.lane.b32.xlu1 %v673_v45, %s1642_s27  ;;  %v825_v37 = vand.u32 4294901760, %v824_v29 }
 0x200   :  { %674 = vrot.lane.b32.xlu0 %v673_v45, %s1645_s28  ;;  %676 = vrot.lane.b32.xlu1 %v673_v45, %s1646_s29 }
 0x266   :  { %v687_v46 = vpop.permute.xlu0 %686  ;;  %v689_v47 = vpop.permute.xlu1 %688 }
 0x267   :  { %v1954_v49 = vand.u32 4294901760, %v687_v46  ;;  %v1956_v50 = vand.u32 4294901760, %v689_v47 }
 0x269   :  { %v1959_v51 = vsub.f32 %v687_v46, %v1954_v49  ;;  %v1962_v52 = vsub.f32 %v689_v47, %v1956_v50  ;;  %1502 = vmatpush3.msra.mxu0 %v1956_v50 }
 0x26a   :  { %v683_v53 = vpop.permute.xlu0 %682  ;;  %1503 = vmatprep.subr.mxu0 %v1637_v2  ;;  %v685_v54 = vpop.permute.xlu1 %684 }
 0x26b   :  { %v802_v57 = vand.u32 4294901760, %v1959_v51  ;;  %v795_v58 = vand.u32 4294901760, %v1962_v52  ;;  %v1974_v59 = vand.u32 4294901760, %v683_v53  ;;  %v1976_v60 = vand.u32 4294901760, %v685_v54  ;;  %1504 = vmatpush3.msra.mxu0 %v1954_v49 }
 0x26c   :  { %1505 = vmatprep.subr.mxu0 %v1637_v2 }
 0x26d   :  { %v803_v61 = vsub.f32 %v1959_v51, %v802_v57  ;;  %v796_v62 = vsub.f32 %v1962_v52, %v795_v58  ;;  %v1987_v63 = vsub.f32 %v683_v53, %v1974_v59  ;;  %v1990_v0 = vsub.f32 %v685_v54, %v1976_v60  ;;  %1506 = vmatpush3.msra.mxu0 %v1976_v60 }
 0x26e   :  { %v679_v1 = vpop.permute.xlu0 %678  ;;  %1507 = vmatprep.subr.mxu0 %v1637_v2  ;;  %v681_v3 = vpop.permute.xlu1 %680 }
 0x26f   :  { %v797_v5 = vand.u32 4294901760, %v796_v62  ;;  %v816_v6 = vand.u32 4294901760, %v1987_v63  ;;  %v809_v7 = vand.u32 4294901760, %v1990_v0  ;;  %1508 = vmatpush3.msra.mxu0 %v1974_v59  ;;  %v1999_v9 = vand.u32 4294901760, %v679_v1 }
 0x270   :  { %v2001_v10 = vand.u32 4294901760, %v681_v3  ;;  %1509 = vmatprep.subr.mxu0 %v1637_v2  ;;  %v804_v11 = vand.u32 4294901760, %v803_v61 }
 0x271   :  { %v817_v12 = vsub.f32 %v1987_v63, %v816_v6  ;;  %v810_v13 = vsub.f32 %v1990_v0, %v809_v7  ;;  %1510 = vmatpush3.msra.mxu0 %v1952_v48  ;;  %1523 = vmatpush3.msra.mxu1 %v797_v5  ;;  %v2012_v14 = vsub.f32 %v679_v1, %v1999_v9 }
 0x272   :  { %v2015_v17 = vsub.f32 %v681_v3, %v2001_v10  ;;  %v675_v18 = vpop.permute.xlu0 %674  ;;  %1524 = vmatprep.subr.mxu1 %v1637_v2  ;;  %v677_v19 = vpop.permute.xlu1 %676  ;;  %1511 = vmatprep.subr.mxu0 %v1637_v2 }
 0x273   :  { %v811_v22 = vand.u32 4294901760, %v810_v13  ;;  %v2022_v23 = vand.u32 4294901760, %v675_v18  ;;  %v2024_v24 = vand.u32 4294901760, %v677_v19  ;;  %1512 = vmatpush3.msra.mxu0 %v2001_v10  ;;  %1525 = vmatpush3.msra.mxu1 %v804_v11  ;;  %v837_v30 = vand.u32 4294901760, %v2012_v14 }
 0x274   :  { %v830_v25 = vand.u32 4294901760, %v2015_v17  ;;  %1513 = vmatprep.subr.mxu0 %v1637_v2  ;;  %1526 = vmatprep.subr.mxu1 %v1637_v2  ;;  %v818_v26 = vand.u32 4294901760, %v817_v12 }
 0x275   :  { %v2035_v27 = vsub.f32 %v675_v18, %v2022_v23  ;;  %v2038_v31 = vsub.f32 %v677_v19, %v2024_v24  ;;  %1514 = vmatpush3.msra.mxu0 %v1999_v9  ;;  %1527 = vmatpush3.msra.mxu1 %v811_v22  ;;  %v838_v34 = vsub.f32 %v2012_v14, %v837_v30 }
 0x276   :  { %v831_v32 = vsub.f32 %v2015_v17, %v830_v25  ;;  %1515 = vmatprep.subr.mxu0 %v1637_v2  ;;  %1528 = vmatprep.subr.mxu1 %v1637_v2 }
 0x277   :  { %v851_v35 = vand.u32 4294901760, %v2035_v27  ;;  %v844_v36 = vand.u32 4294901760, %v2038_v31  ;;  %1516 = vmatpush3.msra.mxu0 %v2024_v24  ;;  %1529 = vmatpush3.msra.mxu1 %v818_v26  ;;  %v839_v39 = vand.u32 4294901760, %v838_v34 }
 0x278   :  { %1517 = vmatprep.subr.mxu0 %v1637_v2  ;;  %1530 = vmatprep.subr.mxu1 %v1637_v2  ;;  %v832_v38 = vand.u32 4294901760, %v831_v32 }
 0x279   :  { %v845_v28 = vsub.f32 %v2038_v31, %v844_v36  ;;  %1518 = vmatpush3.msra.mxu0 %v2022_v23  ;;  %1531 = vmatpush3.msra.mxu1 %v825_v37  ;;  %v852_v40 = vsub.f32 %v2035_v27, %v851_v35 }
 0x27a   :  { %1532 = vmatprep.subr.mxu1 %v1637_v2  ;;  %1543 = vmatprep.subr.mxu0 %v1637_v2 }
 0x27b   :  { %1520 = vmatmul.mubr.f32.vlgmr.msra.gmra.mxu0 %v772_v33  ;;  %1533 = vmatpush3.msra.mxu1 %v832_v38  ;;  %v846_v41 = vand.u32 4294901760, %v845_v28  ;;  %v853_v42 = vand.u32 4294901760, %v852_v40 }
 0x27c   :  { %1544 = vmatpush3.msra.mxu0 %v1962_v52  ;;  %1534 = vmatprep.subr.mxu1 %v1637_v2 }
 0x27d   :  { %1545 = vmatprep.subr.mxu0 %v1637_v2  ;;  %1535 = vmatpush3.msra.mxu1 %v839_v39 }
 0x27e   :  { %1546 = vmatpush3.msra.mxu0 %v1959_v51  ;;  %1536 = vmatprep.subr.mxu1 %v1637_v2 }
 0x27f   :  { %1547 = vmatprep.subr.mxu0 %v1637_v2  ;;  %1537 = vmatpush3.msra.mxu1 %v846_v41 }
 0x280   :  { %1548 = vmatpush3.msra.mxu0 %v1990_v0  ;;  %1538 = vmatprep.subr.mxu1 %v1637_v2 }
 0x281   :  { %1549 = vmatprep.subr.mxu0 %v1637_v2  ;;  %1539 = vmatpush3.msra.mxu1 %v853_v42 }
 0x282   :  { %1550 = vmatpush3.msra.mxu0 %v1987_v63  ;;  %1541 = vmatmul.mubr.f32.vlgmr.msra.gmra.mxu1 %v1950_v20 }
 0x283   :  { %1551 = vmatprep.subr.mxu0 %v1637_v2  ;;  %1564 = vmatprep.subr.mxu1 %v1637_v2 }
 0x284   :  { %1552 = vmatpush3.msra.mxu0 %v1967_v55  ;;  %1565 = vmatpush3.msra.mxu1 %v1956_v50 }
 0x285   :  { %1553 = vmatprep.subr.mxu0 %v1637_v2  ;;  %1566 = vmatprep.subr.mxu1 %v1637_v2 }
 0x286   :  { %1554 = vmatpush3.msra.mxu0 %v2015_v17  ;;  %1567 = vmatpush3.msra.mxu1 %v1954_v49 }
 0x287   :  { %1555 = vmatprep.subr.mxu0 %v1637_v2  ;;  %1568 = vmatprep.subr.mxu1 %v1637_v2 }
 0x288   :  { %1556 = vmatpush3.msra.mxu0 %v2012_v14  ;;  %1569 = vmatpush3.msra.mxu1 %v1976_v60 }
 0x289   :  { %1557 = vmatprep.subr.mxu0 %v1637_v2  ;;  %1570 = vmatprep.subr.mxu1 %v1637_v2 }
 0x28a   :  { %1558 = vmatpush3.msra.mxu0 %v2038_v31  ;;  %1571 = vmatpush3.msra.mxu1 %v1974_v59 }
 0x28b   :  { %1559 = vmatprep.subr.mxu0 %v1637_v2  ;;  %1572 = vmatprep.subr.mxu1 %v1637_v2 }
 0x28c   :  { %1560 = vmatpush3.msra.mxu0 %v2035_v27  ;;  %1561 = vmatprep.mubr.msk.f32.mxu0 %vm1644_vm3, %v1637_v2 }
 0x28d   :  { %1573 = vmatpush3.msra.mxu1 %v1952_v48  ;;  %1562 = vmatmul.mubr.f32.vlgmr.msra.gmra.mxu0 %v1970_v56 }
 0x28e   :  { %1574 = vmatprep.subr.mxu1 %v1637_v2  ;;  %1585 = vmatprep.subr.mxu0 %v1637_v2 }
 0x28f   :  { %1575 = vmatpush3.msra.mxu1 %v2001_v10  ;;  %1586 = vmatpush3.msra.mxu0 %v795_v58 }
 0x290   :  { %1576 = vmatprep.subr.mxu1 %v1637_v2  ;;  %1587 = vmatprep.subr.mxu0 %v1637_v2 }
 0x291   :  { %1577 = vmatpush3.msra.mxu1 %v1999_v9  ;;  %1588 = vmatpush3.msra.mxu0 %v802_v57 }
 0x292   :  { %1578 = vmatprep.subr.mxu1 %v1637_v2  ;;  %1589 = vmatprep.subr.mxu0 %v1637_v2 }
 0x293   :  { %1579 = vmatpush3.msra.mxu1 %v2024_v24  ;;  %1590 = vmatpush3.msra.mxu0 %v809_v7 }
 0x294   :  { %1580 = vmatprep.subr.mxu1 %v1637_v2  ;;  %1591 = vmatprep.subr.mxu0 %v1637_v2 }
 0x295   :  { %1581 = vmatpush3.msra.mxu1 %v2022_v23  ;;  %1582 = vmatprep.mubr.msk.f32.mxu1 %vm1644_vm3, %v1637_v2 }
 0x296   :  { %1592 = vmatpush3.msra.mxu0 %v816_v6  ;;  %1583 = vmatmul.mubr.f32.vlgmr.msra.gmra.mxu1 %v770_v4 }
 0x297   :  { %1593 = vmatprep.subr.mxu0 %v1637_v2  ;;  %1606 = vmatprep.subr.mxu1 %v1637_v2 }
 0x298   :  { %1594 = vmatpush3.msra.mxu0 %v823_v8  ;;  %1607 = vmatpush3.msra.mxu1 %v1956_v50 }
 0x299   :  { %1595 = vmatprep.subr.mxu0 %v1637_v2  ;;  %1608 = vmatprep.subr.mxu1 %v1637_v2 }
 0x29a   :  { %1596 = vmatpush3.msra.mxu0 %v830_v25  ;;  %1609 = vmatpush3.msra.mxu1 %v1954_v49 }
 0x29b   :  { %1597 = vmatprep.subr.mxu0 %v1637_v2  ;;  %1610 = vmatprep.subr.mxu1 %v1637_v2 }
 0x29c   :  { %1598 = vmatpush3.msra.mxu0 %v837_v30  ;;  %1611 = vmatpush3.msra.mxu1 %v1976_v60 }
 0x29d   :  { %1599 = vmatprep.subr.mxu0 %v1637_v2  ;;  %1612 = vmatprep.subr.mxu1 %v1637_v2 }
 0x29e   :  { %1600 = vmatpush3.msra.mxu0 %v844_v36  ;;  %1613 = vmatpush3.msra.mxu1 %v1974_v59 }
 0x29f   :  { %1601 = vmatprep.subr.mxu0 %v1637_v2  ;;  %1614 = vmatprep.subr.mxu1 %v1637_v2 }
 0x2a0   :  { %1602 = vmatpush3.msra.mxu0 %v851_v35  ;;  %1603 = vmatprep.mubr.msk.f32.mxu0 %vm1644_vm3, %v1637_v2 }
 0x2a1   :  { %1615 = vmatpush3.msra.mxu1 %v1952_v48  ;;  %1604 = vmatmul.mubr.f32.vlgmr.msra.gmra.mxu0 %v1950_v20 }
 0x2a2   :  { %1616 = vmatprep.subr.mxu1 %v1637_v2  ;;  %1624 = vmatprep.mubr.msk.f32.mxu1 %vm1644_vm3, %v1637_v2 }
 0x2a3   :  { %1617 = vmatpush3.msra.mxu1 %v2001_v10 }
 0x2a4   :  { %1618 = vmatprep.subr.mxu1 %v1637_v2 }
 0x2a5   :  { %1619 = vmatpush3.msra.mxu1 %v1999_v9 }
 0x2a6   :  { %1620 = vmatprep.subr.mxu1 %v1637_v2 }
 0x2a7   :  { %1621 = vmatpush3.msra.mxu1 %v2024_v24 }
 0x2a8   :  { %1622 = vmatprep.subr.mxu1 %v1637_v2 }
 0x2a9   :  { %1623 = vmatpush3.msra.mxu1 %v2022_v23 }
 0x2aa   :  { %1625 = vmatmul.mubr.f32.vlgmr.msra.gmra.mxu1 %v1950_v20 }
 0x33b   :  { %v774_v43 = vpop.f32.mrf.mxu0 }
 0x33d   :  { %v1521_v44 = vpop.f32.mrf.mxu0 }
 0x342   :  { %v890_v45 = vpop.f32.mrf.mxu1 }
 0x343   :  { %v891_v50 = vadd.f32 %v890_v45, %v774_v43 }
 0x344   :  { %v1542_v15 = vpop.f32.mrf.mxu1 }
 0x34d   :  { %v980_v16 = vpop.f32.mrf.mxu0 }
 0x34e   :  { %v981_v52 = vadd.f32 %v980_v16, %v891_v50 }
 0x34f   :  { %v1563_v46 = vpop.f32.mrf.mxu0 }
 0x356   :  { %v1062_v47 = vpop.f32.mrf.mxu1 }
 0x357   :  { %v1063_v53 = vadd.f32 %v1062_v47, %v981_v52 }
 0x358   :  { %v1584_v48 = vpop.f32.mrf.mxu1 }
 0x361   :  { %v1160_v49 = vpop.f32.mrf.mxu0 }
 0x362   :  { %v1161_v54 = vadd.f32 %v1160_v49, %v1063_v53 }
 0x363   :  { %v1605_v51 = vpop.f32.mrf.mxu0 }
 0x36a   :  { %v1240_v55 = vpop.f32.mrf.mxu1 }
 0x36b   :  { %v1241_v2 = vadd.f32 %v1240_v55, %v1161_v54 }
 0x36c   :  { %v1626_v56 = vpop.f32.mrf.mxu1 }
 0x36d   :  { %1244 = vst [vmem:[%s2168_s5] sm:$0xff] %v1241_v2 }

</bundles_post_ra>
